<compile_context>
chip_gen: v7x
topology: tpu7x:2x2x1
jax: 0.10.0
libtpu: 0.0.40
codegen_flags: <defaults>
</compile_context>

<pallas_src>
import jax
import jax.numpy as jnp
from jax.experimental import pallas as pl
from jax.experimental.pallas import tpu as pltpu


# ----------------------------- kernel ---------------------------------------


def _layer(h_bf16, w_ref, b_ref):
    # bf16 operands -> MXU, f32 accumulation, f32 bias + ReLU.
    acc = jnp.dot(h_bf16, w_ref[...], preferred_element_type=jnp.float32)
    return jnp.maximum(acc + b_ref[...], 0.0)


def sae_kernel(x_ref, w1_ref, b1_ref, w2_ref, b2_ref,
               w3_ref, b3_ref, w4_ref, b4_ref, o_ref):
    # Whole 4-layer MLP on one batch tile; intermediates recast to bf16 so the
    # next matmul also feeds the MXU bf16 operands (VPU cast is cheap & hidden
    # under the MXU pushes).
    x = x_ref[...].astype(jnp.bfloat16)
    h = _layer(x, w1_ref, b1_ref).astype(jnp.bfloat16)   # D  -> 2D
    h = _layer(h, w2_ref, b2_ref).astype(jnp.bfloat16)   # 2D -> 3D
    h = _layer(h, w3_ref, b3_ref).astype(jnp.bfloat16)   # 3D -> 2D
    o = _layer(h, w4_ref, b4_ref)                        # 2D -> D (f32)
    o_ref[...] = o.astype(o_ref.dtype)


# ----------------------------- wrapper ---------------------------------------


def _choose_batch_tile(batch):
    """Largest tile <= 256 rows (multiple of 8) dividing batch that still
    yields >= 4 pipeline steps; falls back to the largest divisor."""
    candidates = [t for t in (256, 128, 64, 32, 16, 8) if batch % t == 0]
    for t in candidates:
        if batch // t >= 4:
            return t
    return candidates[0] if candidates else batch


def _vmem_limit_bytes(batch_tile, d, param_bytes):
    io = 2 * batch_tile * d * (4 + 4)        # x (f32) + out (f32), double-buffered
    hidden = batch_tile * 7 * d * (4 + 2)    # f32 intermediates + bf16 recasts
    need = 2 * param_bytes + io + hidden + (4 << 20)
    return int(min(max(need, 16 << 20), 100 << 20))


def sparse_autoencoder_forward(x, params, *, batch_tile=None):
    """x: [B, D] float32. params: bf16 weights [in, out], f32 biases [1, out]."""
    B, D = x.shape
    if batch_tile is None:
        batch_tile = _choose_batch_tile(B)
    assert B % batch_tile == 0

    w1, b1 = params["w1"], params["b1"]
    w2, b2 = params["w2"], params["b2"]
    w3, b3 = params["w3"], params["b3"]
    w4, b4 = params["w4"], params["b4"]
    param_bytes = sum(p.nbytes for p in (w1, b1, w2, b2, w3, b3, w4, b4))

    # Grid-invariant operands: constant index_map + single buffering.
    def invariant(arr):
        return pl.BlockSpec(arr.shape, lambda i: (0, 0),
                            pipeline_mode=pl.Buffered(1))

    # TODO(synk): for very large D (resident weights approaching VMEM, esp.
    # v7x's 64 MiB/TC), stream w2/w3 from HBM with pltpu.emit_pipeline instead
    # of keeping all four weight matrices resident.

    flops = 32 * B * D * D  # 2 * B * (2D^2 + 6D^2 + 6D^2 + 2D^2)
    cost = pl.CostEstimate(
        flops=flops,
        transcendentals=0,
        bytes_accessed=x.nbytes + B * D * 4 + param_bytes,
    )

    return pl.pallas_call(
        sae_kernel,
        out_shape=jax.ShapeDtypeStruct((B, D), jnp.float32),
        grid_spec=pltpu.PrefetchScalarGridSpec(
            num_scalar_prefetch=0,
            grid=(B // batch_tile,),
            in_specs=[
                pl.BlockSpec((batch_tile, D), lambda i: (i, 0)),  # x tile (f32)
                invariant(w1), invariant(b1),
                invariant(w2), invariant(b2),
                invariant(w3), invariant(b3),
                invariant(w4), invariant(b4),
            ],
            out_specs=pl.BlockSpec((batch_tile, D), lambda i: (i, 0)),
        ),
        compiler_params=pltpu.CompilerParams(
            dimension_semantics=("parallel",),
            vmem_limit_bytes=_vmem_limit_bytes(batch_tile, D, param_bytes),
        ),
        cost_estimate=cost,
    )(x, w1, b1, w2, b2, w3, b3, w4, b4)


# ----------------------------- init & reference ------------------------------


def init_params(key, input_size):
    """Mirror nn.Linear default init (uniform(-1/sqrt(fin), 1/sqrt(fin))).
    Weights stored transposed as [in, out] in bf16; biases as [1, out] f32."""
    dims = [
        (input_size, input_size * 2),
        (input_size * 2, input_size * 3),
        (input_size * 3, input_size * 2),
        (input_size * 2, input_size),
    ]
    params = {}
    for idx, (fin, fout) in enumerate(dims, start=1):
        key, kw, kb = jax.random.split(key, 3)
        bound = 1.0 / (fin ** 0.5)
        w_pt = jax.random.uniform(kw, (fout, fin), jnp.float32, -bound, bound)
        b_pt = jax.random.uniform(kb, (fout,), jnp.float32, -bound, bound)
        params[f"w{idx}"] = jnp.transpose(w_pt).astype(jnp.bfloat16)  # [in, out]
        params[f"b{idx}"] = b_pt.reshape(1, fout)                     # [1, out] f32
    return params


def reference_forward(x, params):
    """Pure-JAX reference with the same bf16-operand / f32-accumulate recipe."""
    h = x.astype(jnp.bfloat16)
    for i in range(1, 5):
        acc = jnp.dot(h, params[f"w{i}"], preferred_element_type=jnp.float32)
        h = jnp.maximum(acc + params[f"b{i}"], 0.0)
        if i < 4:
            h = h.astype(jnp.bfloat16)
    return h


# ----------------------------- test -----------------------------------------


if __name__ == "__main__":
    key = jax.random.PRNGKey(0)
    key, kx = jax.random.split(key)

    input_size = 128      # multiple of 128 -> lane-dense MXU / store path
    batch = 256           # tiled into 4 grid steps of 64 rows

    x = jax.random.normal(kx, (batch, input_size), jnp.float32)
    params = init_params(key, input_size)

    out = jax.block_until_ready(sparse_autoencoder_forward(x, params))
    ref = reference_forward(x, params)

    assert out.shape == (batch, input_size)
    max_err = float(jnp.max(jnp.abs(out - ref.astype(jnp.float32))))
    assert jnp.allclose(out, ref.astype(jnp.float32), atol=1e-2, rtol=1e-2), (
        f"mismatch vs reference, max abs err = {max_err}")

    print("KERNEL_OK")
</pallas_src>

<mosaic_0001>
module attributes {stable_mosaic.version = 11 : i64} {
  func.func @sae_kernel(%arg0: i32, %arg1: memref<64x128xf32, #tpu.memory_space<vmem>>, %arg2: memref<128x256xbf16, #tpu.memory_space<vmem>>, %arg3: memref<1x256xf32, #tpu.memory_space<vmem>>, %arg4: memref<256x384xbf16, #tpu.memory_space<vmem>>, %arg5: memref<1x384xf32, #tpu.memory_space<vmem>>, %arg6: memref<384x256xbf16, #tpu.memory_space<vmem>>, %arg7: memref<1x256xf32, #tpu.memory_space<vmem>>, %arg8: memref<256x128xbf16, #tpu.memory_space<vmem>>, %arg9: memref<1x128xf32, #tpu.memory_space<vmem>>, %arg10: memref<64x128xf32, #tpu.memory_space<vmem>>) attributes {dimension_semantics = [#tpu.dimension_semantics<parallel>], iteration_bounds = array<i64: 4>, scalar_prefetch = 0 : i64, scratch_operands = 0 : i64, tpu.core_type = #tpu.core_type<tc>, window_params = [{transform_indices = @transform_0, window_bounds = array<i64: 64, 128>}, {pipeline_mode = #tpu.pipeline_mode<synchronous>, transform_indices = @transform_1, window_bounds = array<i64: 128, 256>}, {pipeline_mode = #tpu.pipeline_mode<synchronous>, transform_indices = @transform_2, window_bounds = array<i64: 1, 256>}, {pipeline_mode = #tpu.pipeline_mode<synchronous>, transform_indices = @transform_3, window_bounds = array<i64: 256, 384>}, {pipeline_mode = #tpu.pipeline_mode<synchronous>, transform_indices = @transform_4, window_bounds = array<i64: 1, 384>}, {pipeline_mode = #tpu.pipeline_mode<synchronous>, transform_indices = @transform_5, window_bounds = array<i64: 384, 256>}, {pipeline_mode = #tpu.pipeline_mode<synchronous>, transform_indices = @transform_6, window_bounds = array<i64: 1, 256>}, {pipeline_mode = #tpu.pipeline_mode<synchronous>, transform_indices = @transform_7, window_bounds = array<i64: 256, 128>}, {pipeline_mode = #tpu.pipeline_mode<synchronous>, transform_indices = @transform_8, window_bounds = array<i64: 1, 128>}, {transform_indices = @transform_9, window_bounds = array<i64: 64, 128>}]} {
    %c0 = arith.constant 0 : index
    %c0_0 = arith.constant 0 : index
    %0 = vector.load %arg1[%c0, %c0_0] : memref<64x128xf32, #tpu.memory_space<vmem>>, vector<64x128xf32>
    %1 = arith.truncf %0 : vector<64x128xf32> to vector<64x128xbf16>
    %c0_1 = arith.constant 0 : index
    %c0_2 = arith.constant 0 : index
    %2 = vector.load %arg2[%c0_1, %c0_2] : memref<128x256xbf16, #tpu.memory_space<vmem>>, vector<128x256xbf16>
    %cst = arith.constant dense<0.000000e+00> : vector<64x256xf32>
    %3 = tpu.matmul %1, %2, %cst {dimension_numbers = #tpu.dot_dimension_numbers<[1], [0], [0], [1], [0, 0, 1, 1], [], []>} : vector<64x128xbf16>, vector<128x256xbf16>, vector<64x256xf32> -> vector<64x256xf32>
    %c0_3 = arith.constant 0 : index
    %c0_4 = arith.constant 0 : index
    %4 = vector.load %arg3[%c0_3, %c0_4] : memref<1x256xf32, #tpu.memory_space<vmem>>, vector<1x256xf32>
    %5 = vector.broadcast %4 : vector<1x256xf32> to vector<64x256xf32>
    %6 = arith.addf %3, %5 : vector<64x256xf32>
    %cst_5 = arith.constant 0.000000e+00 : f32
    %7 = vector.broadcast %cst_5 : f32 to vector<64x256xf32>
    %8 = arith.maximumf %6, %7 : vector<64x256xf32>
    %9 = arith.truncf %8 : vector<64x256xf32> to vector<64x256xbf16>
    %c0_6 = arith.constant 0 : index
    %c0_7 = arith.constant 0 : index
    %10 = vector.load %arg4[%c0_6, %c0_7] : memref<256x384xbf16, #tpu.memory_space<vmem>>, vector<256x384xbf16>
    %cst_8 = arith.constant dense<0.000000e+00> : vector<64x384xf32>
    %11 = tpu.matmul %9, %10, %cst_8 {dimension_numbers = #tpu.dot_dimension_numbers<[1], [0], [0], [1], [0, 0, 1, 1], [], []>} : vector<64x256xbf16>, vector<256x384xbf16>, vector<64x384xf32> -> vector<64x384xf32>
    %c0_9 = arith.constant 0 : index
    %c0_10 = arith.constant 0 : index
    %12 = vector.load %arg5[%c0_9, %c0_10] : memref<1x384xf32, #tpu.memory_space<vmem>>, vector<1x384xf32>
    %13 = vector.broadcast %12 : vector<1x384xf32> to vector<64x384xf32>
    %14 = arith.addf %11, %13 : vector<64x384xf32>
    %cst_11 = arith.constant 0.000000e+00 : f32
    %15 = vector.broadcast %cst_11 : f32 to vector<64x384xf32>
    %16 = arith.maximumf %14, %15 : vector<64x384xf32>
    %17 = arith.truncf %16 : vector<64x384xf32> to vector<64x384xbf16>
    %c0_12 = arith.constant 0 : index
    %c0_13 = arith.constant 0 : index
    %18 = vector.load %arg6[%c0_12, %c0_13] : memref<384x256xbf16, #tpu.memory_space<vmem>>, vector<384x256xbf16>
    %cst_14 = arith.constant dense<0.000000e+00> : vector<64x256xf32>
    %19 = tpu.matmul %17, %18, %cst_14 {dimension_numbers = #tpu.dot_dimension_numbers<[1], [0], [0], [1], [0, 0, 1, 1], [], []>} : vector<64x384xbf16>, vector<384x256xbf16>, vector<64x256xf32> -> vector<64x256xf32>
    %c0_15 = arith.constant 0 : index
    %c0_16 = arith.constant 0 : index
    %20 = vector.load %arg7[%c0_15, %c0_16] : memref<1x256xf32, #tpu.memory_space<vmem>>, vector<1x256xf32>
    %21 = vector.broadcast %20 : vector<1x256xf32> to vector<64x256xf32>
    %22 = arith.addf %19, %21 : vector<64x256xf32>
    %cst_17 = arith.constant 0.000000e+00 : f32
    %23 = vector.broadcast %cst_17 : f32 to vector<64x256xf32>
    %24 = arith.maximumf %22, %23 : vector<64x256xf32>
    %25 = arith.truncf %24 : vector<64x256xf32> to vector<64x256xbf16>
    %c0_18 = arith.constant 0 : index
    %c0_19 = arith.constant 0 : index
    %26 = vector.load %arg8[%c0_18, %c0_19] : memref<256x128xbf16, #tpu.memory_space<vmem>>, vector<256x128xbf16>
    %cst_20 = arith.constant dense<0.000000e+00> : vector<64x128xf32>
    %27 = tpu.matmul %25, %26, %cst_20 {dimension_numbers = #tpu.dot_dimension_numbers<[1], [0], [0], [1], [0, 0, 1, 1], [], []>} : vector<64x256xbf16>, vector<256x128xbf16>, vector<64x128xf32> -> vector<64x128xf32>
    %c0_21 = arith.constant 0 : index
    %c0_22 = arith.constant 0 : index
    %28 = vector.load %arg9[%c0_21, %c0_22] : memref<1x128xf32, #tpu.memory_space<vmem>>, vector<1x128xf32>
    %29 = vector.broadcast %28 : vector<1x128xf32> to vector<64x128xf32>
    %30 = arith.addf %27, %29 : vector<64x128xf32>
    %cst_23 = arith.constant 0.000000e+00 : f32
    %31 = vector.broadcast %cst_23 : f32 to vector<64x128xf32>
    %32 = arith.maximumf %30, %31 : vector<64x128xf32>
    %c0_24 = arith.constant 0 : index
    %c0_25 = arith.constant 0 : index
    %33 = vector.load %arg10[%c0_24, %c0_25] : memref<64x128xf32, #tpu.memory_space<vmem>>, vector<64x128xf32>
    tpu.vector_store %arg10[%c0_24, %c0_25], %32 {strides = array<i32>} : memref<64x128xf32, #tpu.memory_space<vmem>>, vector<64x128xf32>,
    return
  }
  func.func @transform_0(%arg0: i32) -> (i32, i32) {
    %c0_i32 = arith.constant 0 : i32
    %c0_i32_0 = arith.constant 0 : i32
    return %arg0, %c0_i32 : i32, i32
  }
  func.func @transform_1(%arg0: i32) -> (i32, i32) {
    %c0_i32 = arith.constant 0 : i32
    %c0_i32_0 = arith.constant 0 : i32
    %c0_i32_1 = arith.constant 0 : i32
    return %c0_i32, %c0_i32_0 : i32, i32
  }
  func.func @transform_2(%arg0: i32) -> (i32, i32) {
    %c0_i32 = arith.constant 0 : i32
    %c0_i32_0 = arith.constant 0 : i32
    %c0_i32_1 = arith.constant 0 : i32
    return %c0_i32, %c0_i32_0 : i32, i32
  }
  func.func @transform_3(%arg0: i32) -> (i32, i32) {
    %c0_i32 = arith.constant 0 : i32
    %c0_i32_0 = arith.constant 0 : i32
    %c0_i32_1 = arith.constant 0 : i32
    return %c0_i32, %c0_i32_0 : i32, i32
  }
  func.func @transform_4(%arg0: i32) -> (i32, i32) {
    %c0_i32 = arith.constant 0 : i32
    %c0_i32_0 = arith.constant 0 : i32
    %c0_i32_1 = arith.constant 0 : i32
    return %c0_i32, %c0_i32_0 : i32, i32
  }
  func.func @transform_5(%arg0: i32) -> (i32, i32) {
    %c0_i32 = arith.constant 0 : i32
    %c0_i32_0 = arith.constant 0 : i32
    %c0_i32_1 = arith.constant 0 : i32
    return %c0_i32, %c0_i32_0 : i32, i32
  }
  func.func @transform_6(%arg0: i32) -> (i32, i32) {
    %c0_i32 = arith.constant 0 : i32
    %c0_i32_0 = arith.constant 0 : i32
    %c0_i32_1 = arith.constant 0 : i32
    return %c0_i32, %c0_i32_0 : i32, i32
  }
  func.func @transform_7(%arg0: i32) -> (i32, i32) {
    %c0_i32 = arith.constant 0 : i32
    %c0_i32_0 = arith.constant 0 : i32
    %c0_i32_1 = arith.constant 0 : i32
    return %c0_i32, %c0_i32_0 : i32, i32
  }
  func.func @transform_8(%arg0: i32) -> (i32, i32) {
    %c0_i32 = arith.constant 0 : i32
    %c0_i32_0 = arith.constant 0 : i32
    %c0_i32_1 = arith.constant 0 : i32
    return %c0_i32, %c0_i32_0 : i32, i32
  }
  func.func @transform_9(%arg0: i32) -> (i32, i32) {
    %c0_i32 = arith.constant 0 : i32
    %c0_i32_0 = arith.constant 0 : i32
    return %arg0, %c0_i32 : i32, i32
  }
}

</mosaic_0001>

<bundles_post_ra>
// kernel: tpu_custom_call.1
= control target key start
LH: loop header
LB: loop body
LE: loop exit
PB: predicated region body
PF: predicated region fallthrough
CT: control target
= control target key end

     0   :  { %s3171_s0 = inlined_call_operand.hbm [shape: f32[256,128], index: 0, kind: input, shape index: {}]   ;;  %s3172_s1 = inlined_call_operand.hbm [shape: bf16[128,256], index: 1, kind: input, shape index: {}]   ;;  %s3173_s2 = inlined_call_operand.vmem [shape: f32[1,256], index: 2, kind: input, shape index: {}]   ;;  %s3174_s3 = inlined_call_operand.hbm [shape: bf16[256,384], index: 3, kind: input, shape index: {}]   ;;  %s3175_s4 = inlined_call_operand.vmem [shape: f32[1,384], index: 4, kind: input, shape index: {}]   ;;  %s3176_s5 = inlined_call_operand.hbm [shape: bf16[384,256], index: 5, kind: input, shape index: {}]   ;;  %s3177_s6 = inlined_call_operand.vmem [shape: f32[1,256], index: 6, kind: input, shape index: {}]   ;;  %s3178_s7 = inlined_call_operand.hbm [shape: bf16[256,128], index: 7, kind: input, shape index: {}]   ;;  %s3179_s8 = inlined_call_operand.vmem [shape: f32[1,128], index: 8, kind: input, shape index: {}]   ;;  %s3180_s9 = inlined_call_operand.hbm [shape: f32[256,128], index: 9, kind: output, shape index: {}]  }
   0x1   :  { %3189 = sst [smem:[#allocation18_spill]] %s3180_s9 }
   0x2   :  { %14 = vsyncpa [#allocation3], 0 }
   0x3   :  { %16 = vsyncpa [#allocation3 + $0x1], 0 }
   0x4   :  { %17 = vsyncpa [#allocation6], 0 }
   0x5   :  { %18 = vsyncpa [#allocation9], 0 }
   0x6   :  { %19 = vsyncpa [#allocation4], 0 }
   0x7   :  { %21 = vsyncpa [#allocation4 + $0x1], 0  ;;  %s2771_s30 = smov 0   ;;  %s2773_s10 = smov 0  }
   0x8   :  { %s2775_s11 = smov 0   ;;  %s2777_s12 = smov 0  }
   0x9 LB: > { %3190 = sst [smem:[#allocation16_spill]] %s2692_s30  ;;  %s2792_s13 = sadd.s32 4294967295, %s2704_s12   ;;  %s2704_s12 = sphi %s2777_s12, %s3215_s12   ;;  %s2700_s11 = sphi %s2775_s11, %s3214_s11   ;;  %s2696_s10 = sphi %s2773_s10, %s3213_s10   ;;  %s2692_s30 = sphi %s2771_s30, %s3212_s30  }
   0xa   : > { %s1951_s14 = sadd.s32 4294967294, %s2704_s12   ;;  %p47_p0 = scmp.ne.s32.totalorder %s2696_s10, %s2692_s30 }
   0xb   : > { %p3181_p1 = scmp.eq.s32.totalorder %s2792_s13, 0  ;;  %p245_p3 = scmp.eq.s32.totalorder %s1951_s14, 3 }
   0xc   : > { %p1952_p5 = scmp.ge.s32.totalorder %s2704_s12, 1  ;;  %p252_p7 = scmp.lt.s32.totalorder %s2704_s12, 5 }
   0xd   : > { %p2801_p4 = por %p3181_p1, %p47_p0  ;;  %p2806_p6 = por %p245_p3, %p47_p0 }
   0xe   : > { %p2811_p8 = pnand %p1952_p5, %p252_p7  ;;  %s2706_s18 = smov [#allocation5]  }
   0xf   : > { %s3191_s15 = scalar_select %p2801_p4, 1, 0 }
  0x10   : > { %s3192_s16 = scalar_select %p2806_p6, 1, 0 }
  0x11   : > { %s3194_s17 = scalar_select %p2811_p8, 1, 0 }
  0x12   : > { %3193 = sst [smem:[#allocation17_spill]] %s3192_s16  ;;  %s264_s19 = sshll.u32 %s2706_s18, 4  ;;  %s2815_s19 = int_to_ptr.vmem [resolvable:$true] %s264_s19 }
  0x13   : > { %p2236_p9 = pneg %p2811_p8  ;;  %s2707_s21 = smov [#allocation8]  }
  0x14   : > { %s296_s22 = sshll.u32 %s2707_s21, 4  ;;  %s2708_s23 = smov [#allocation7]   ;;  %s2825_s22 = int_to_ptr.vmem [resolvable:$true] %s296_s22 }
  0x15   : > { %p2821_p10 = pnand %p2236_p9, %p3181_p1  ;;  %s2827_s24 = sshll.u32 %s2708_s23, 4  ;;  %s281_s24 = int_to_ptr.vmem [resolvable:$true] %s2827_s24 }
  0x16   : > { %s2488_s27 = scalar_lea.hbm %s3172_s1, 2048 }
  0x17   : > { %p2489_p11 = scmp.ne.s32.totalorder %s3172_s1, %s2488_s27  ;;  %p2837_p12 = pneg %p2821_p10 }
  0x18   : > { %p2495_p3 = scmp.lt.u32.totalorder %s2488_s27, %s3172_s1 }
  0x19   : > { %p2491_p13 = pnand %p2837_p12, %p2489_p11 }
  0x1b   : > { %p2492_p0 = pneg %p2491_p13 }
  0x1d   : > { %p2497_p5 = pnand %p2495_p3, %p2492_p0 }
  0x1f   : > { %2500 = shalt.err (!%p2497_p5)
}
  0x20   : > { %s2501_s23 = scalar_lea.vmem %s2815_s19, 2048  ;;  %p2509_p2 = scmp.lt.s32.totalorder %s2815_s19, %s2815_s19 }
  0x21   : > { %p2502_p7 = scmp.ne.s32.totalorder %s2815_s19, %s2501_s23  ;;  %p2510_p6 = scmp.lt.s32.totalorder %s2501_s23, %s2501_s23 }
  0x23   : > { %p2504_p9 = pnand %p2502_p7, %p2837_p12  ;;  %p2511_p11 = por %p2510_p6, %p2509_p2 }
  0x25   : > { %p2505_p1 = pneg %p2504_p9 }
  0x27   : > { %p2512_p13 = pnand %p2511_p11, %p2505_p1 }
  0x29   : > { %2515 = shalt.err (!%p2512_p13)
}
  0x2a   : > { %s3187_s25 = smov 128   ;;  %s3188_s26 = smov 8  }
  0x2b   : > { %2239 = dma.hbm_to_vmem [thread:$0]  (!%p2821_p10), %s3172_s1, 2048, %s2815_s19, [#allocation6], %s3187_s25, %s3187_s25, %s3188_s26  }
  0x2c   : > { %s2516_s21 = scalar_lea.hbm %s3176_s5, 6144 }
  0x2d   : > { %p2517_p1 = scmp.ne.s32.totalorder %s3176_s5, %s2516_s21  ;;  %p2523_p0 = scmp.lt.u32.totalorder %s2516_s21, %s3176_s5 }
  0x2f   : > { %p2519_p2 = pnand %p2517_p1, %p2837_p12 }
  0x31   : > { %p2520_p6 = pneg %p2519_p2 }
  0x33   : > { %p2525_p3 = pnand %p2523_p0, %p2520_p6 }
  0x35   : > { %2528 = shalt.err (!%p2525_p3)
}
  0x36   : > { %s2529_s19 = scalar_lea.vmem %s2825_s22, 6144  ;;  %p2537_p11 = scmp.lt.s32.totalorder %s2825_s22, %s2825_s22 }
  0x37   : > { %p2530_p5 = scmp.ne.s32.totalorder %s2825_s22, %s2529_s19  ;;  %p2538_p13 = scmp.lt.s32.totalorder %s2529_s19, %s2529_s19 }
  0x39   : > { %p2532_p7 = pnand %p2530_p5, %p2837_p12  ;;  %p2539_p1 = por %p2538_p13, %p2537_p11 }
  0x3b   : > { %p2533_p9 = pneg %p2532_p7 }
  0x3d   : > { %p2540_p2 = pnand %p2539_p1, %p2533_p9 }
  0x3f   : > { %2543 = shalt.err (!%p2540_p2)
}
  0x40   : > { %2245 = dma.hbm_to_vmem [thread:$0]  (!%p2821_p10), %s3176_s5, 6144, %s2825_s22, [#allocation9], %s3187_s25, %s3187_s25, %s3188_s26  }
  0x41   : > { %s2544_s28 = scalar_lea.hbm %s3174_s3, 6144 }
  0x42   : > { %p2545_p6 = scmp.ne.s32.totalorder %s3174_s3, %s2544_s28  ;;  %p2551_p5 = scmp.lt.u32.totalorder %s2544_s28, %s3174_s3 }
  0x44   : > { %p2547_p0 = pnand %p2545_p6, %p2837_p12 }
  0x46   : > { %p2548_p3 = pneg %p2547_p0 }
  0x48   : > { %p2553_p7 = pnand %p2551_p5, %p2548_p3 }
  0x4a   : > { %2556 = shalt.err (!%p2553_p7)
}
  0x4b   : > { %s2557_s19 = scalar_lea.vmem %s281_s24, 6144  ;;  %p2565_p1 = scmp.lt.s32.totalorder %s281_s24, %s281_s24 }
  0x4c   : > { %p2558_p9 = scmp.ne.s32.totalorder %s281_s24, %s2557_s19  ;;  %p2566_p2 = scmp.lt.s32.totalorder %s2557_s19, %s2557_s19 }
  0x4e   : > { %p2560_p11 = pnand %p2558_p9, %p2837_p12  ;;  %p2567_p4 = por %p2566_p2, %p2565_p1 }
  0x50   : > { %p2561_p13 = pneg %p2560_p11 }
  0x52   : > { %p2568_p8 = pnand %p2567_p4, %p2561_p13 }
  0x54   : > { %2571 = shalt.err (!%p2568_p8)
}
  0x55   : > { %s2711_s22 = smov 192   ;;  %s2712_s9 = smov 12  }
  0x56   : > { %2242 = dma.hbm_to_vmem [thread:$0]  (!%p2821_p10), %s3174_s3, 6144, %s281_s24, [#allocation6], %s2711_s22, %s2711_s22, %s2712_s9  }
  0x57   : > { %s2713_s27 = smov [#allocation10]   ;;  %s2572_s21 = scalar_lea.hbm %s3178_s7, 2048 }
  0x58   : > { %s312_s28 = sshll.u32 %s2713_s27, 4  ;;  %p2573_p4 = scmp.ne.s32.totalorder %s3178_s7, %s2572_s21  ;;  %s313_s28 = int_to_ptr.vmem [resolvable:$true] %s312_s28 }
  0x59   : > { %p2579_p0 = scmp.lt.u32.totalorder %s2572_s21, %s3178_s7 }
  0x5a   : > { %p2575_p8 = pnand %p2573_p4, %p2837_p12 }
  0x5c   : > { %p2576_p6 = pneg %p2575_p8 }
  0x5e   : > { %p2581_p3 = pnand %p2579_p0, %p2576_p6 }
  0x60   : > { %2584 = shalt.err (!%p2581_p3)
}
  0x61   : > { %s2585_s24 = scalar_lea.vmem %s313_s28, 2048  ;;  %p2593_p11 = scmp.lt.s32.totalorder %s313_s28, %s313_s28 }
  0x62   : > { %p2586_p5 = scmp.ne.s32.totalorder %s313_s28, %s2585_s24  ;;  %p2594_p13 = scmp.lt.s32.totalorder %s2585_s24, %s2585_s24 }
  0x64   : > { %p2588_p7 = pnand %p2586_p5, %p2837_p12  ;;  %p2595_p1 = por %p2594_p13, %p2593_p11 }
  0x66   : > { %p2589_p9 = pneg %p2588_p7 }
  0x68   : > { %p2596_p2 = pnand %p2595_p1, %p2589_p9 }
  0x6a   : > { %2599 = shalt.err (!%p2596_p2)
}
  0x6b   : > { %s2714_s22 = smov 64   ;;  %s2715_s14 = smov 4  }
  0x6c   : > { %2248 = dma.hbm_to_vmem [thread:$0]  (!%p2821_p10), %s3178_s7, 2048, %s313_s28, [#allocation9], %s2714_s22, %s2714_s22, %s2715_s14  }
  0x6d   : > { %s2925_s9 = sadd.s32 1, %s2704_s12   ;;  %s34_s16 = sadd.s32 1, %s2700_s11 }
  0x6e   : > { %s31_s30 = ssub.s32 %s2704_s12, %s2925_s9  ;;  %p41_p4 = scmp.ne.s32.totalorder %s2700_s11, %s2696_s10 }
  0x6f   : > { %p32_p12 = scmp.eq.s32.totalorder %s31_s30, 0  ;;  %p42_p8 = scmp.eq.s32.totalorder %s2704_s12, 0 }
  0x70   : > { %p3197_p0 = scmp.eq.s32.totalorder %s2792_s13, 3  ;;  %p2261_p5 = scmp.lt.s32.totalorder %s2704_s12, 4 }
  0x71   : > { %s2934_s27 = scalar_select %p32_p12, %s2700_s11, %s34_s16  }
  0x72   : > { %p43_p6 = por %p42_p8, %p41_p4  ;;  %p2938_p3 = por %p3197_p0, %p41_p4 }
  0x73   : > { %s329_s20 = sand.u32 1, %s2700_s11   ;;  %s2102_s28 = sshll.u32 %s2704_s12, 10 }
  0x74   : > { %s1958_s18 = sshll.u32 %s329_s20, 6  ;;  %s2948_s19 = scalar_lea.hbm %s3171_s0, %s2102_s28 }
  0x75   : > { %s333_s24 = scalar_lea.vmem [#allocation2], %s1958_s18  ;;  %p2952_p10 = pnand %p2261_p5, %p43_p6 }
  0x76   : > { %s340_s22 = sshll.u32 %s333_s24, 4  ;;  %s2956_s25 = scalar_lea.sflag [#allocation3], %s329_s20  ;;  %s2950_s22 = int_to_ptr.vmem [resolvable:$true] %s340_s22 }
  0x77   : > { %s2600_s26 = scalar_lea.hbm %s2948_s19, 1024  ;;  %p2602_p9 = pneg %p2952_p10 }
  0x78   : > { %p2601_p7 = scmp.ne.s32.totalorder %s2948_s19, %s2600_s26  ;;  %s2605_s18 = scalar_lea.hbm %s3171_s0, 4096 }
  0x79   : > { %p2606_p1 = scmp.lt.u32.totalorder %s2948_s19, %s3171_s0  ;;  %p2607_p2 = scmp.lt.u32.totalorder %s2605_s18, %s2600_s26 }
  0x7a   : > { %p2603_p11 = pnand %p2602_p9, %p2601_p7  ;;  %p2609_p4 = scmp.lt.u32.totalorder %s2600_s26, %s2948_s19 }
  0x7b   : > { %p2608_p12 = por %p2607_p2, %p2606_p1 }
  0x7c   : > { %p2604_p13 = pneg %p2603_p11 }
  0x7d   : > { %p2610_p8 = por %p2609_p4, %p2608_p12 }
  0x7f   : > { %p2611_p6 = pnand %p2610_p8, %p2604_p13 }
  0x81   : > { %2614 = shalt.err (!%p2611_p6)
}
  0x82   : > { %s2615_s20 = scalar_lea.vmem %s2950_s22, 1024  ;;  %s2716_s23 = smov [#allocation2]  }
  0x83   : > { %p2616_p0 = scmp.ne.s32.totalorder %s2950_s22, %s2615_s20  ;;  %s2620_s24 = sshll.u32 %s2716_s23, 4  ;;  %s2621_s24 = int_to_ptr.vmem [resolvable:$false] %s2620_s24 }
  0x84   : > { %s2622_s30 = scalar_lea.vmem %s2621_s24, 2048  ;;  %p2623_p11 = scmp.lt.s32.totalorder %s2950_s22, %s2621_s24 }
  0x85   : > { %p2618_p5 = pnand %p2616_p0, %p2602_p9  ;;  %p2624_p1 = scmp.lt.s32.totalorder %s2622_s30, %s2615_s20 }
  0x87   : > { %p2619_p7 = pneg %p2618_p5  ;;  %p2625_p2 = por %p2624_p1, %p2623_p11 }
  0x89   : > { %p2626_p12 = pnand %p2625_p2, %p2619_p7 }
  0x8b   : > { %2629 = shalt.err (!%p2626_p12)
}
  0x8c   : > { %s3200_s26 = smov 8   ;;  %s3201_s16 = smov 128  }
  0x8d   : > { %2252 = dma.hbm_to_vmem [thread:$0]  (!%p2952_p10), %s2948_s19, 1024, %s2950_s22, %s2956_s25, %s3201_s16, %s3201_s16, %s3200_s26  }
  0x8e   : > { %p3202_p9 = scmp.ne.s32.totalorder %s3194_s17, 0 }
  0x8f   : > { %s2990_s18 = sand.u32 (!%p3202_p9), 1, %s2696_s10   ;;  %p3203_p13 = scmp.ne.s32.totalorder (!%p3202_p9), %s3191_s15, 0 }
  0x90   : > { %352 = sbr.rel (%p3202_p9) target bundleno = 1150 (0x47e), region = 56  ;;  %s1962_s28 = sshll.u32 (!%p3202_p9), %s2990_s18, 6 }
  0x91   : > { %s355_s21 = scalar_lea.sflag (!%p3202_p9), [#allocation3], %s2990_s18  ;;  %s2996_s14 = scalar_lea.vmem (!%p3202_p9), [#allocation2], %s1962_s28 }
  0x97   : > { %2675 = dma.done.wait (%p3203_p13), %s355_s21, 1024  }
  0x98   : > { %2677 = vsyncadd (%p3203_p13), %s355_s21, 4294966272  ;;  %p3204_p10 = scmp.eq.s32.totalorder %s2792_s13, 0 }
  0x9a   : > { %2679 = dma.done.wait (%p3204_p10), [#allocation6], 8192   ;;  %p3205_p4 = pmov %p3204_p10 }
  0x9c   : > { %2681 = vsyncadd (%p3205_p4), [#allocation6], 4294959104  ;;  %p3206_p8 = pmov %p3205_p4 }
  0x9d   : > { %p3207_p6 = pmov %p3205_p4 }
  0x9e   : > { %2683 = dma.done.wait (%p3206_p8), [#allocation9], 8192  }
  0x9f   : > { %2685 = vsyncadd (%p3207_p6), [#allocation9], 4294959104  ;;  %v2717_v0 = vmov 0   ;;  %v2312_v1 = vld [vmem:[#allocation5 + $0x4] ss:$8 sps:$4 sm:$0xff]   ;;  %v414_v28 = vld [vmem:[%s2996_s14 + $0x10] sm:$0xff] }
  0xa0   : > { %564 = vmatprep.mubr.bf16.mxu1 %v2717_v0  ;;  %v2314_v2 = vld [vmem:[#allocation5] ss:$8 sps:$4 sm:$0xff]   ;;  %532 = vmatprep.subr.bf16.mxu1 %v2312_v1  ;;  %v2315_v3 = vld [vmem:[#allocation5 + $0x14] ss:$8 sps:$4 sm:$0xff]   ;;  %v2317_v4 = vld [vmem:[#allocation5 + $0x10] ss:$8 sps:$4 sm:$0xff]  }
  0xa1   : > { %533 = vmatpush1.bf16.msra.mxu1 %v2314_v2  ;;  %v2318_v5 = vld [vmem:[#allocation5 + $0x24] ss:$8 sps:$4 sm:$0xff]   ;;  %v2320_v6 = vld [vmem:[#allocation5 + $0x20] ss:$8 sps:$4 sm:$0xff]   ;;  %v2321_v7 = vld [vmem:[#allocation5 + $0x34] ss:$8 sps:$4 sm:$0xff]  }
  0xa2   : > { %534 = vmatprep.subr.bf16.mxu1 %v2315_v3  ;;  %v2323_v8 = vld [vmem:[#allocation5 + $0x30] ss:$8 sps:$4 sm:$0xff]   ;;  %v2324_v9 = vld [vmem:[#allocation5 + $0x44] ss:$8 sps:$4 sm:$0xff]   ;;  %v2326_v10 = vld [vmem:[#allocation5 + $0x40] ss:$8 sps:$4 sm:$0xff]  }
  0xa3   : > { %v2327_v11 = vld [vmem:[#allocation5 + $0x54] ss:$8 sps:$4 sm:$0xff]   ;;  %v2329_v12 = vld [vmem:[#allocation5 + $0x50] ss:$8 sps:$4 sm:$0xff]   ;;  %v2330_v13 = vld [vmem:[#allocation5 + $0x64] ss:$8 sps:$4 sm:$0xff]  }
  0xa4   : > { %v2332_v14 = vld [vmem:[#allocation5 + $0x60] ss:$8 sps:$4 sm:$0xff]   ;;  %v2333_v15 = vld [vmem:[#allocation5 + $0x74] ss:$8 sps:$4 sm:$0xff]   ;;  %v2335_v16 = vld [vmem:[#allocation5 + $0x70] ss:$8 sps:$4 sm:$0xff]  }
  0xa5   : > { %535 = vmatpush1.bf16.msra.mxu1 %v2317_v4  ;;  %v412_v17 = vld [vmem:[%s2996_s14] sm:$0xff]  ;;  %v413_v18 = vld [vmem:[%s2996_s14 + $0x8] sm:$0xff]  ;;  %v415_v29 = vld [vmem:[%s2996_s14 + $0x18] sm:$0xff]  ;;  %s3111_s30 = scalar_lea.vmem [#allocation11], %s1962_s28  ;;  %s2103_s16 = sshll.u32 %s2792_s13, 10 }
  0xa6   : > { %536 = vmatprep.subr.bf16.mxu1 %v2318_v5  ;;  %v2363_v19 = vld [vmem:[#allocation7 + $0xc8] ss:$12 sps:$4 sm:$0xff]   ;;  %v2338_v21 = vld [vmem:[#allocation7 + $0x4] ss:$12 sps:$4 sm:$0xff]   ;;  %v2368_v22 = vld [vmem:[#allocation7 + $0xe0] ss:$12 sps:$4 sm:$0xff]   ;;  %v420_v23 = vpack.c.bf16 %v413_v18, %v412_v17  ;;  %v421_v35 = vpack.c.bf16 %v415_v29, %v414_v28 }
  0xa7   : > { %v2364_v20 = vld [vmem:[#allocation7 + $0x8] ss:$12 sps:$4 sm:$0xff]   ;;  %2104 = vmatprep.subr.bf16.mxu0 %v2363_v19  ;;  %v2369_v24 = vld [vmem:[#allocation7 + $0x20] ss:$12 sps:$4 sm:$0xff]   ;;  %v2373_v27 = vld [vmem:[#allocation7 + $0xf8] ss:$12 sps:$4 sm:$0xff]  }
  0xa8   : > { %2105 = vmatpush3.bf16.msra.mxu0 %v2364_v20  ;;  %v2336_v25 = vld [vmem:[#allocation7] ss:$12 sps:$4 sm:$0xff]   ;;  %v2341_v26 = vld [vmem:[#allocation7 + $0x1c] ss:$12 sps:$4 sm:$0xff]   ;;  %v2374_v30 = vld [vmem:[#allocation7 + $0x38] ss:$12 sps:$4 sm:$0xff]  }
  0xa9   : > { %537 = vmatpush1.bf16.msra.mxu1 %v2320_v6  ;;  %2106 = vmatprep.subr.bf16.mxu0 %v2368_v22  ;;  %v2339_v31 = vld [vmem:[#allocation7 + $0x18] ss:$12 sps:$4 sm:$0xff]   ;;  %v2344_v32 = vld [vmem:[#allocation7 + $0x34] ss:$12 sps:$4 sm:$0xff]   ;;  %v2378_v33 = vld [vmem:[#allocation7 + $0x110] ss:$12 sps:$4 sm:$0xff]  }
  0xaa   : > { %538 = vmatprep.subr.bf16.mxu1 %v2321_v7  ;;  %v2379_v34 = vld [vmem:[#allocation7 + $0x50] ss:$12 sps:$4 sm:$0xff]   ;;  %v2383_v37 = vld [vmem:[#allocation7 + $0x128] ss:$12 sps:$4 sm:$0xff]   ;;  %v2347_v38 = vld [vmem:[#allocation7 + $0x4c] ss:$12 sps:$4 sm:$0xff]  }
  0xab   : > { %v2342_v36 = vld [vmem:[#allocation7 + $0x30] ss:$12 sps:$4 sm:$0xff]   ;;  %v416_v39 = vld [vmem:[%s2996_s14 + $0x20] sm:$0xff]  ;;  %v417_v40 = vld [vmem:[%s2996_s14 + $0x28] sm:$0xff]  ;;  %s1840_s26 = sshll.u32 %s3111_s30, 4  ;;  %s1827_s17 = scalar_lea.sflag [#allocation4], %s2990_s18  ;;  %s3121_s26 = int_to_ptr.vmem [resolvable:$true] %s1840_s26 }
  0xac   : > { %2107 = vmatpush3.bf16.msra.mxu0 %v2369_v24  ;;  %v2345_v41 = vld [vmem:[#allocation7 + $0x48] ss:$12 sps:$4 sm:$0xff]   ;;  %v2388_v43 = vld [vmem:[#allocation7 + $0x140] ss:$12 sps:$4 sm:$0xff]   ;;  %v2350_v44 = vld [vmem:[#allocation7 + $0x64] ss:$12 sps:$4 sm:$0xff]   ;;  %v422_v46 = vpack.c.bf16 %v417_v40, %v416_v39 }
  0xad   : > { %539 = vmatpush1.bf16.msra.mxu1 %v2323_v8  ;;  %2108 = vmatprep.subr.bf16.mxu0 %v2373_v27  ;;  %v2384_v42 = vld [vmem:[#allocation7 + $0x68] ss:$12 sps:$4 sm:$0xff]   ;;  %v2348_v45 = vld [vmem:[#allocation7 + $0x60] ss:$12 sps:$4 sm:$0xff]   ;;  %v419_v49 = vld [vmem:[%s2996_s14 + $0x38] sm:$0xff]  ;;  %s2630_s19 = scalar_lea.vmem %s3121_s26, 1024 }
  0xae   : > { %540 = vmatprep.subr.bf16.mxu1 %v2324_v9  ;;  %v2353_v47 = vld [vmem:[#allocation7 + $0x7c] ss:$12 sps:$4 sm:$0xff]   ;;  %v418_v48 = vld [vmem:[%s2996_s14 + $0x30] sm:$0xff]  ;;  %v2351_v50 = vld [vmem:[#allocation7 + $0x78] ss:$12 sps:$4 sm:$0xff]   ;;  %s3208_s14 = sld [smem:[#allocation18_spill]]  ;;  %p2631_p0 = scmp.ne.s32.totalorder %s3121_s26, %s2630_s19 }
  0xaf   : > { %v2356_v51 = vld [vmem:[#allocation7 + $0x94] ss:$12 sps:$4 sm:$0xff]   ;;  %v2354_v52 = vld [vmem:[#allocation7 + $0x90] ss:$12 sps:$4 sm:$0xff]   ;;  %v423_v53 = vpack.c.bf16 %v419_v49, %v418_v48  ;;  %v2359_v54 = vld [vmem:[#allocation7 + $0xac] ss:$12 sps:$4 sm:$0xff]  }
  0xb0   : > { %2109 = vmatpush3.bf16.msra.mxu0 %v2374_v30  ;;  %v2357_v55 = vld [vmem:[#allocation7 + $0xa8] ss:$12 sps:$4 sm:$0xff]   ;;  %v2362_v56 = vld [vmem:[#allocation7 + $0xc4] ss:$12 sps:$4 sm:$0xff]   ;;  %v2360_v57 = vld [vmem:[#allocation7 + $0xc0] ss:$12 sps:$4 sm:$0xff]   ;;  %p2632_p5 = pnand %p2631_p0, %p2938_p3 }
  0xb1   : > { %541 = vmatpush1.bf16.msra.mxu1 %v2326_v10  ;;  %2110 = vmatprep.subr.bf16.mxu0 %v2378_v33  ;;  %v2367_v58 = vld [vmem:[#allocation7 + $0xdc] ss:$12 sps:$4 sm:$0xff]   ;;  %v2365_v59 = vld [vmem:[#allocation7 + $0xd8] ss:$12 sps:$4 sm:$0xff]   ;;  %v2372_v60 = vld [vmem:[#allocation7 + $0xf4] ss:$12 sps:$4 sm:$0xff]  }
  0xb2   : > { %542 = vmatprep.subr.bf16.mxu1 %v2327_v11  ;;  %v2370_v61 = vld [vmem:[#allocation7 + $0xf0] ss:$12 sps:$4 sm:$0xff]   ;;  %v2377_v62 = vld [vmem:[#allocation7 + $0x10c] ss:$12 sps:$4 sm:$0xff]   ;;  %v2375_v63 = vld [vmem:[#allocation7 + $0x108] ss:$12 sps:$4 sm:$0xff]   ;;  %p2633_p7 = pneg %p2632_p5 }
  0xb3   : > { %v2382_v1 = vld [vmem:[#allocation7 + $0x124] ss:$12 sps:$4 sm:$0xff]   ;;  %v2380_v2 = vld [vmem:[#allocation7 + $0x120] ss:$12 sps:$4 sm:$0xff]   ;;  %v2387_v3 = vld [vmem:[#allocation7 + $0x13c] ss:$12 sps:$4 sm:$0xff]  }
  0xb4   : > { %2111 = vmatpush3.bf16.msra.mxu0 %v2379_v34  ;;  %v2385_v4 = vld [vmem:[#allocation7 + $0x138] ss:$12 sps:$4 sm:$0xff]   ;;  %v2389_v5 = vld [vmem:[#allocation7 + $0x80] ss:$12 sps:$4 sm:$0xff]   ;;  %v2390_v8 = vld [vmem:[#allocation7 + $0x150] ss:$12 sps:$4 sm:$0xff]   ;;  %s3126_s15 = scalar_lea.hbm %s3208_s14, %s2103_s16 }
  0xb5   : > { %543 = vmatpush1.bf16.msra.mxu1 %v2329_v12  ;;  %2112 = vmatprep.subr.bf16.mxu0 %v2383_v37  ;;  %v2392_v6 = vld [vmem:[#allocation7 + $0x154] ss:$12 sps:$4 sm:$0xff]   ;;  %v2393_v7 = vld [vmem:[#allocation7 + $0x158] ss:$12 sps:$4 sm:$0xff]   ;;  %v2398_v11 = vld [vmem:[#allocation7 + $0x170] ss:$12 sps:$4 sm:$0xff]  }
  0xb6   : > { %544 = vmatprep.subr.bf16.mxu1 %v2330_v13  ;;  %v2394_v9 = vld [vmem:[#allocation7 + $0x98] ss:$12 sps:$4 sm:$0xff]   ;;  %v2395_v12 = vld [vmem:[#allocation7 + $0x168] ss:$12 sps:$4 sm:$0xff]   ;;  %v2399_v13 = vld [vmem:[#allocation7 + $0xb0] ss:$12 sps:$4 sm:$0xff]  }
  0xb7   : > { %v2397_v10 = vld [vmem:[#allocation7 + $0x16c] ss:$12 sps:$4 sm:$0xff]   ;;  %v440_v18 = vld [vmem:[%s3173_s2] sm:$0x3]  ;;  %v2405_v40 = vld [vmem:[#allocation8 + $0x14] ss:$8 sps:$4 sm:$0xff]  }
  0xb8   : > { %2113 = vmatpush3.bf16.msra.mxu0 %v2384_v42  ;;  %v2400_v37 = vld [vmem:[#allocation8] ss:$8 sps:$4 sm:$0xff]   ;;  %v2408_v49 = vld [vmem:[#allocation8 + $0x24] ss:$8 sps:$4 sm:$0xff]   ;;  %s2718_s13 = smov [#allocation11]  }
  0xb9   : > { %545 = vmatpush1.bf16.msra.mxu1 %v2332_v14  ;;  %2114 = vmatprep.subr.bf16.mxu0 %v2388_v43  ;;  %v2402_v14 = vld [vmem:[#allocation8 + $0x4] ss:$8 sps:$4 sm:$0xff]   ;;  %s2634_s22 = sshll.u32 %s2718_s13, 4  ;;  %s2635_s22 = int_to_ptr.vmem [resolvable:$false] %s2634_s22 }
  0xba   : > { %546 = vmatprep.subr.bf16.mxu1 %v2333_v15  ;;  %v442_v15 = vlaneseq  ;;  %s2636_s25 = scalar_lea.vmem %s2635_s22, 2048  ;;  %p2637_p11 = scmp.lt.s32.totalorder %s3121_s26, %s2635_s22 }
  0xbb   : > { %p2638_p1 = scmp.lt.s32.totalorder %s2636_s25, %s2630_s19 }
  0xbc   : > { %2115 = vmatpush3.bf16.msra.mxu0 %v2389_v5 }
  0xbd   : > { %547 = vmatpush1.bf16.msra.mxu1 %v2335_v16  ;;  %2116 = vmatprep.subr.bf16.mxu0 %v2393_v7  ;;  %v3022_v16 = vshrl.u32 %v442_v15, 7  ;;  %p2639_p2 = por %p2638_p1, %p2637_p11 }
  0xbe   : > { %966 = vmatprep.subr.bf16.mxu1 %v2338_v21 }
  0xbf   : > { %v3025_v17 = vsub.s32 0, %v3022_v16  ;;  %v3031_v19 = vsub.s32 1, %v3022_v16  ;;  %p2640_p12 = pnand %p2639_p2, %p2633_p7 }
  0xc0   : > { %565 = vmatmul.mubr.bf16.vlgmr.msra.gmra.mrb[0].mxu1 %v420_v23  ;;  %2117 = vmatpush3.bf16.msra.mxu0 %v2394_v9 }
  0xc1   : > { %574 = vmatprep.mubr.bf16.mxu1 %v2717_v0  ;;  %967 = vmatpush1.bf16.msra.mxu1 %v2336_v25  ;;  %v3034_v20 = vrot.slane %v440_v18, %v3025_v17  ;;  %v3037_v21 = vrot.slane %v440_v18, %v3031_v19 }
  0xc2   : > { %968 = vmatprep.subr.bf16.mxu1 %v2341_v26  ;;  %2118 = vmatprep.subr.bf16.mxu0 %v2398_v11 }
  0xc4   : > { %2119 = vmatpush3.bf16.msra.mxu0 %v2399_v13  ;;  %v2417_v13 = vld [vmem:[#allocation8 + $0x54] ss:$8 sps:$4 sm:$0xff]  }
  0xc5   : > { %969 = vmatpush1.bf16.msra.mxu1 %v2339_v31  ;;  %1440 = vmatprep.subr.bf16.mxu0 %v2402_v14 }
  0xc6   : > { %970 = vmatprep.subr.bf16.mxu1 %v2344_v32 }
  0xc8   : > { %575 = vmatmul.mubr.bf16.gmra.mrb[4].mxu1 %v421_v35 }
  0xc9   : > { %584 = vmatprep.mubr.bf16.mxu1 %v2717_v0  ;;  %971 = vmatpush1.bf16.msra.mxu1 %v2342_v36 }
  0xca   : > { %972 = vmatprep.subr.bf16.mxu1 %v2347_v38 }
  0xcd   : > { %973 = vmatpush1.bf16.msra.mxu1 %v2345_v41 }
  0xce   : > { %974 = vmatprep.subr.bf16.mxu1 %v2350_v44 }
  0xd0   : > { %585 = vmatmul.mubr.bf16.gmra.mrb[8].mxu1 %v422_v46  ;;  %v2403_v46 = vld [vmem:[#allocation8 + $0x10] ss:$8 sps:$4 sm:$0xff]  }
  0xd1   : > { %594 = vmatprep.mubr.bf16.mxu1 %v2717_v0  ;;  %975 = vmatpush1.bf16.msra.mxu1 %v2348_v45 }
  0xd2   : > { %976 = vmatprep.subr.bf16.mxu1 %v2353_v47 }
  0xd5   : > { %977 = vmatpush1.bf16.msra.mxu1 %v2351_v50 }
  0xd6   : > { %978 = vmatprep.subr.bf16.mxu1 %v2356_v51 }
  0xd8   : > { %595 = vmatmul.mubr.bf16.gmra.mrb[12].mxu1 %v423_v53 }
  0xd9   : > { %979 = vmatpush1.bf16.msra.mxu1 %v2354_v52 }
  0xda   : > { %980 = vmatprep.subr.bf16.mxu1 %v2359_v54 }
  0xdd   : > { %981 = vmatpush1.bf16.msra.mxu1 %v2357_v55  ;;  %v2406_v55 = vld [vmem:[#allocation8 + $0x20] ss:$8 sps:$4 sm:$0xff]  }
  0xde   : > { %982 = vmatprep.subr.bf16.mxu1 %v2362_v56 }
  0xe1   : > { %983 = vmatpush1.bf16.msra.mxu1 %v2360_v57 }
  0xe2   : > { %984 = vmatprep.subr.bf16.mxu1 %v2367_v58  ;;  %v2411_v58 = vld [vmem:[#allocation8 + $0x34] ss:$8 sps:$4 sm:$0xff]  }
  0xe5   : > { %985 = vmatpush1.bf16.msra.mxu1 %v2365_v59 }
  0xe6   : > { %986 = vmatprep.subr.bf16.mxu1 %v2372_v60 }
  0xe9   : > { %987 = vmatpush1.bf16.msra.mxu1 %v2370_v61 }
  0xea   : > { %988 = vmatprep.subr.bf16.mxu1 %v2377_v62 }
  0xed   : > { %989 = vmatpush1.bf16.msra.mxu1 %v2375_v63 }
  0xee   : > { %990 = vmatprep.subr.bf16.mxu1 %v2382_v1  ;;  %v2409_v1 = vld [vmem:[#allocation8 + $0x30] ss:$8 sps:$4 sm:$0xff]  }
  0xf1   : > { %991 = vmatpush1.bf16.msra.mxu1 %v2380_v2 }
  0xf2   : > { %992 = vmatprep.subr.bf16.mxu1 %v2387_v3 }
  0xf5   : > { %993 = vmatpush1.bf16.msra.mxu1 %v2385_v4  ;;  %v2414_v4 = vld [vmem:[#allocation8 + $0x44] ss:$8 sps:$4 sm:$0xff]  }
  0xf6   : > { %994 = vmatprep.subr.bf16.mxu1 %v2392_v6 }
  0xf9   : > { %995 = vmatpush1.bf16.msra.mxu1 %v2390_v8 }
  0xfa   : > { %996 = vmatprep.subr.bf16.mxu1 %v2397_v10  ;;  %v2412_v10 = vld [vmem:[#allocation8 + $0x40] ss:$8 sps:$4 sm:$0xff]  }
  0xfd   : > { %997 = vmatpush1.bf16.msra.mxu1 %v2395_v12 }
 0x193   : > { %v566_v22 = vpop.f32.mrb[0].mxu1 }
 0x194   : > { %v567_v23 = vadd.f32 %v566_v22, %v3034_v20  ;;  %v568_v24 = vpop.f32.mrb[1].mxu1 }
 0x195   : > { %v569_v25 = vadd.f32 %v568_v24, %v3037_v21  ;;  %v570_v26 = vpop.f32.mrb[2].mxu1  ;;  %v2415_v24 = vld [vmem:[#allocation8 + $0x50] ss:$8 sps:$4 sm:$0xff]  }
 0x196   : > { %v571_v27 = vadd.f32 %v570_v26, %v3034_v20  ;;  %v572_v28 = vpop.f32.mrb[3].mxu1  ;;  %v605_v30 = vmax.f32 %v567_v23, 0.0 }
 0x197   : > { %v573_v29 = vadd.f32 %v572_v28, %v3037_v21  ;;  %v606_v32 = vmax.f32 %v569_v25, 0.0 }
 0x198   : > { %v607_v31 = vmax.f32 %v571_v27, 0.0  ;;  %v2420_v27 = vld [vmem:[#allocation8 + $0x64] ss:$8 sps:$4 sm:$0xff]  }
 0x199   : > { %v608_v33 = vmax.f32 %v573_v29, 0.0 }
 0x19a   : > { %v621_v34 = vpack.c.bf16 %v607_v31, %v605_v30 }
 0x19b   : > { %v622_v35 = vpack.c.bf16 %v608_v33, %v606_v32  ;;  %v576_v36 = vpop.f32.mrb[4].mxu1  ;;  %v2418_v32 = vld [vmem:[#allocation8 + $0x60] ss:$8 sps:$4 sm:$0xff]   ;;  %v2423_v33 = vld [vmem:[#allocation8 + $0x74] ss:$8 sps:$4 sm:$0xff]  }
 0x19c   : > { %v577_v38 = vadd.f32 %v576_v36, %v3034_v20  ;;  %v578_v39 = vpop.f32.mrb[5].mxu1  ;;  %v2427_v36 = vld [vmem:[#allocation8 + $0x90] ss:$8 sps:$4 sm:$0xff]  }
 0x19d   : > { %v579_v41 = vadd.f32 %v578_v39, %v3037_v21  ;;  %v580_v42 = vpop.f32.mrb[6].mxu1  ;;  %998 = vmatprep.mubr.bf16.mxu1 %v622_v35  ;;  %1071 = vmatprep.mubr.bf16.mxu0 %v622_v35  ;;  %v2429_v35 = vld [vmem:[#allocation8 + $0x94] ss:$8 sps:$4 sm:$0xff]  }
 0x19e   : > { %v581_v43 = vadd.f32 %v580_v42, %v3034_v20  ;;  %v582_v44 = vpop.f32.mrb[7].mxu1  ;;  %999 = vmatmul.mubr.bf16.vlgmr.msra.gmra.mrb[16].mxu1 %v621_v34  ;;  %1072 = vmatmul.mubr.bf16.vlgmr.msra.gmra.mrb[0].mxu0 %v621_v34  ;;  %v609_v47 = vmax.f32 %v577_v38, 0.0  ;;  %v2424_v34 = vld [vmem:[#allocation8 + $0x80] ss:$8 sps:$4 sm:$0xff]   ;;  %v2435_v39 = vld [vmem:[#allocation8 + $0xb4] ss:$8 sps:$4 sm:$0xff]  }
 0x19f   : > { %v583_v45 = vadd.f32 %v582_v44, %v3037_v21  ;;  %1441 = vmatpush1.bf16.msra.mxu0 %v2400_v37  ;;  %v610_v50 = vmax.f32 %v579_v41, 0.0  ;;  %v2432_v37 = vld [vmem:[#allocation8 + $0xa4] ss:$8 sps:$4 sm:$0xff]   ;;  %v2430_v38 = vld [vmem:[#allocation8 + $0xa0] ss:$8 sps:$4 sm:$0xff]  }
 0x1a0   : > { %v611_v48 = vmax.f32 %v581_v43, 0.0  ;;  %1442 = vmatprep.subr.bf16.mxu0 %v2405_v40  ;;  %v2433_v40 = vld [vmem:[#allocation8 + $0xb0] ss:$8 sps:$4 sm:$0xff]   ;;  %v2438_v41 = vld [vmem:[#allocation8 + $0xc4] ss:$8 sps:$4 sm:$0xff]  }
 0x1a1   : > { %v612_v51 = vmax.f32 %v583_v45, 0.0  ;;  %v2436_v42 = vld [vmem:[#allocation8 + $0xc0] ss:$8 sps:$4 sm:$0xff]   ;;  %v2441_v43 = vld [vmem:[#allocation8 + $0xd4] ss:$8 sps:$4 sm:$0xff]  }
 0x1a2   : > { %v623_v52 = vpack.c.bf16 %v611_v48, %v609_v47  ;;  %v2439_v44 = vld [vmem:[#allocation8 + $0xd0] ss:$8 sps:$4 sm:$0xff]   ;;  %v2444_v45 = vld [vmem:[#allocation8 + $0xe4] ss:$8 sps:$4 sm:$0xff]   ;;  %v2447_v47 = vld [vmem:[#allocation8 + $0xf4] ss:$8 sps:$4 sm:$0xff]  }
 0x1a3   : > { %v624_v53 = vpack.c.bf16 %v612_v51, %v610_v50  ;;  %v586_v54 = vpop.f32.mrb[8].mxu1  ;;  %1443 = vmatpush1.bf16.msra.mxu0 %v2403_v46  ;;  %v2442_v46 = vld [vmem:[#allocation8 + $0xe0] ss:$8 sps:$4 sm:$0xff]   ;;  %v2445_v48 = vld [vmem:[#allocation8 + $0xf0] ss:$8 sps:$4 sm:$0xff]  }
 0x1a4   : > { %v587_v56 = vadd.f32 %v586_v54, %v3034_v20  ;;  %v588_v57 = vpop.f32.mrb[9].mxu1  ;;  %1444 = vmatprep.subr.bf16.mxu0 %v2408_v49  ;;  %v2450_v49 = vld [vmem:[#allocation8 + $0x104] ss:$8 sps:$4 sm:$0xff]   ;;  %v2476_v54 = vld [vmem:[#allocation10 + $0x50] sm:$0xff]  }
 0x1a5   : > { %v589_v59 = vadd.f32 %v588_v57, %v3037_v21  ;;  %v590_v60 = vpop.f32.mrb[10].mxu1  ;;  %1008 = vmatprep.mubr.bf16.mxu1 %v624_v53  ;;  %1079 = vmatprep.mubr.bf16.mxu0 %v624_v53  ;;  %v2472_v50 = vld [vmem:[#allocation10 + $0x40] sm:$0xff]   ;;  %v2475_v53 = vld [vmem:[#allocation10 + $0x8] sm:$0xff]   ;;  %v2479_v57 = vld [vmem:[#allocation10 + $0x18] sm:$0xff]  }
 0x1a6   : > { %v591_v61 = vadd.f32 %v590_v60, %v3034_v20  ;;  %v592_v62 = vpop.f32.mrb[11].mxu1  ;;  %1009 = vmatmul.mubr.bf16.gmra.mrb[20].mxu1 %v623_v52  ;;  %1080 = vmatmul.mubr.bf16.gmra.mrb[4].mxu0 %v623_v52  ;;  %v613_v2 = vmax.f32 %v587_v56, 0.0  ;;  %v2473_v51 = vld [vmem:[#allocation10] sm:$0xff]   ;;  %v2474_v52 = vld [vmem:[#allocation10 + $0x48] sm:$0xff]   ;;  %v2478_v56 = vld [vmem:[#allocation10 + $0x58] sm:$0xff]  }
 0x1a7   : > { %v593_v63 = vadd.f32 %v592_v62, %v3037_v21  ;;  %1445 = vmatpush1.bf16.msra.mxu0 %v2406_v55  ;;  %v614_v5 = vmax.f32 %v589_v59, 0.0  ;;  %2144 = vmatprep.subr.bf16.mxu1 %v2472_v50  ;;  %v2477_v55 = vld [vmem:[#allocation10 + $0x10] sm:$0xff]   ;;  %v2481_v59 = vld [vmem:[#allocation10 + $0x20] sm:$0xff]   ;;  %v2482_v60 = vld [vmem:[#allocation10 + $0x68] sm:$0xff]  }
 0x1a8   : > { %v615_v3 = vmax.f32 %v591_v61, 0.0  ;;  %1446 = vmatprep.subr.bf16.mxu0 %v2411_v58  ;;  %2145 = vmatpush3.bf16.msra.mxu1 %v2473_v51  ;;  %v2480_v58 = vld [vmem:[#allocation10 + $0x60] sm:$0xff]   ;;  %v2483_v61 = vld [vmem:[#allocation10 + $0x28] sm:$0xff]  }
 0x1a9   : > { %v616_v6 = vmax.f32 %v593_v63, 0.0  ;;  %2146 = vmatprep.subr.bf16.mxu1 %v2474_v52  ;;  %v693_v62 = vld [vmem:[%s3175_s4] sm:$0x7]  ;;  %v705_v63 = vsub.s32 2, %v3022_v16  ;;  %v2456_v51 = vld [vmem:[#allocation8 + $0x124] ss:$8 sps:$4 sm:$0xff]  }
 0x1aa   : > { %v625_v7 = vpack.c.bf16 %v615_v3, %v613_v2  ;;  %v3063_v2 = vrot.slane %v693_v62, %v3031_v19 }
 0x1ab   : > { %v626_v8 = vpack.c.bf16 %v616_v6, %v614_v5  ;;  %v596_v9 = vpop.f32.mrb[12].mxu1  ;;  %1447 = vmatpush1.bf16.msra.mxu0 %v2409_v1  ;;  %v3060_v1 = vrot.slane %v693_v62, %v3025_v17  ;;  %v3065_v5 = vrot.slane %v693_v62, %v705_v63 }
 0x1ac   : > { %v597_v11 = vadd.f32 %v596_v9, %v3034_v20  ;;  %v598_v12 = vpop.f32.mrb[13].mxu1  ;;  %1448 = vmatprep.subr.bf16.mxu0 %v2414_v4  ;;  %2147 = vmatpush3.bf16.msra.mxu1 %v2475_v53 }
 0x1ad   : > { %v599_v14 = vadd.f32 %v598_v12, %v3037_v21  ;;  %v600_v15 = vpop.f32.mrb[14].mxu1  ;;  %1018 = vmatprep.mubr.bf16.mxu1 %v626_v8  ;;  %1087 = vmatprep.mubr.bf16.mxu0 %v626_v8 }
 0x1ae   : > { %v601_v18 = vadd.f32 %v600_v15, %v3034_v20  ;;  %v602_v22 = vpop.f32.mrb[15].mxu1  ;;  %1019 = vmatmul.mubr.bf16.gmra.mrb[24].mxu1 %v625_v7  ;;  %1088 = vmatmul.mubr.bf16.gmra.mrb[8].mxu0 %v625_v7  ;;  %v617_v25 = vmax.f32 %v597_v11, 0.0  ;;  %v2421_v20 = vld [vmem:[#allocation8 + $0x70] ss:$8 sps:$4 sm:$0xff]  }
 0x1af   : > { %v603_v23 = vadd.f32 %v602_v22, %v3037_v21  ;;  %1449 = vmatpush1.bf16.msra.mxu0 %v2412_v10  ;;  %v618_v28 = vmax.f32 %v599_v14, 0.0  ;;  %v2426_v21 = vld [vmem:[#allocation8 + $0x84] ss:$8 sps:$4 sm:$0xff]   ;;  %2148 = vmatprep.subr.bf16.mxu1 %v2476_v54 }
 0x1b0   : > { %v619_v26 = vmax.f32 %v601_v18, 0.0  ;;  %1450 = vmatprep.subr.bf16.mxu0 %v2417_v13  ;;  %2149 = vmatpush3.bf16.msra.mxu1 %v2477_v55 }
 0x1b1   : > { %v620_v29 = vmax.f32 %v603_v23, 0.0  ;;  %2150 = vmatprep.subr.bf16.mxu1 %v2478_v56 }
 0x1b2   : > { %v627_v30 = vpack.c.bf16 %v619_v26, %v617_v25 }
 0x1b3   : > { %v628_v31 = vpack.c.bf16 %v620_v29, %v618_v28  ;;  %1451 = vmatpush1.bf16.msra.mxu0 %v2415_v24 }
 0x1b4   : > { %1452 = vmatprep.subr.bf16.mxu0 %v2420_v27  ;;  %2151 = vmatpush3.bf16.msra.mxu1 %v2479_v57 }
 0x1b5   : > { %1028 = vmatprep.mubr.bf16.mxu1 %v628_v31  ;;  %1095 = vmatprep.mubr.bf16.mxu0 %v628_v31 }
 0x1b6   : > { %1029 = vmatmul.mubr.bf16.gmra.mrb[28].mxu1 %v627_v30  ;;  %1096 = vmatmul.mubr.bf16.gmra.mrb[12].mxu0 %v627_v30 }
 0x1b7   : > { %1453 = vmatpush1.bf16.msra.mxu0 %v2418_v32  ;;  %2152 = vmatprep.subr.bf16.mxu1 %v2480_v58 }
 0x1b8   : > { %1454 = vmatprep.subr.bf16.mxu0 %v2423_v33  ;;  %2153 = vmatpush3.bf16.msra.mxu1 %v2481_v59 }
 0x1b9   : > { %2154 = vmatprep.subr.bf16.mxu1 %v2482_v60 }
 0x1bb   : > { %1455 = vmatpush1.bf16.msra.mxu0 %v2421_v20  ;;  %v2448_v20 = vld [vmem:[#allocation8 + $0x100] ss:$8 sps:$4 sm:$0xff]  }
 0x1bc   : > { %1456 = vmatprep.subr.bf16.mxu0 %v2426_v21  ;;  %2155 = vmatpush3.bf16.msra.mxu1 %v2483_v61  ;;  %v2454_v61 = vld [vmem:[#allocation8 + $0x120] ss:$8 sps:$4 sm:$0xff]  }
 0x1bf   : > { %1457 = vmatpush1.bf16.msra.mxu0 %v2424_v34 }
 0x1c0   : > { %1458 = vmatprep.subr.bf16.mxu0 %v2429_v35 }
 0x1c3   : > { %1459 = vmatpush1.bf16.msra.mxu0 %v2427_v36  ;;  %v2453_v36 = vld [vmem:[#allocation8 + $0x114] ss:$8 sps:$4 sm:$0xff]  }
 0x1c4   : > { %1460 = vmatprep.subr.bf16.mxu0 %v2432_v37 }
 0x1c7   : > { %1461 = vmatpush1.bf16.msra.mxu0 %v2430_v38 }
 0x1c8   : > { %1462 = vmatprep.subr.bf16.mxu0 %v2435_v39 }
 0x1cb   : > { %1463 = vmatpush1.bf16.msra.mxu0 %v2433_v40 }
 0x1cc   : > { %1464 = vmatprep.subr.bf16.mxu0 %v2438_v41 }
 0x1cf   : > { %1465 = vmatpush1.bf16.msra.mxu0 %v2436_v42 }
 0x1d0   : > { %1466 = vmatprep.subr.bf16.mxu0 %v2441_v43 }
 0x1d3   : > { %1467 = vmatpush1.bf16.msra.mxu0 %v2439_v44 }
 0x1d4   : > { %1468 = vmatprep.subr.bf16.mxu0 %v2444_v45 }
 0x1d7   : > { %1469 = vmatpush1.bf16.msra.mxu0 %v2442_v46 }
 0x1d8   : > { %1470 = vmatprep.subr.bf16.mxu0 %v2447_v47 }
 0x1db   : > { %1471 = vmatpush1.bf16.msra.mxu0 %v2445_v48  ;;  %v2451_v48 = vld [vmem:[#allocation8 + $0x110] ss:$8 sps:$4 sm:$0xff]  }
 0x1dc   : > { %1513 = vmatprep.subr.bf16.mxu0 %v2450_v49 }
 0x271   : > { %v1000_v3 = vpop.f32.mrb[16].mxu1  ;;  %v2120_v4 = vpop.f32.mrb[0].mxu0 }
 0x272   : > { %v1001_v6 = vadd.f32 %v1000_v3, %v3060_v1  ;;  %v1002_v7 = vpop.f32.mrb[17].mxu1  ;;  %v2121_v8 = vpop.f32.mrb[1].mxu0 }
 0x273   : > { %v1003_v9 = vadd.f32 %v1002_v7, %v3063_v2  ;;  %v2122_v10 = vadd.f32 %v2121_v8, %v2120_v4  ;;  %v1004_v11 = vpop.f32.mrb[18].mxu1  ;;  %v2123_v12 = vpop.f32.mrb[2].mxu0  ;;  %v2459_v4 = vld [vmem:[#allocation8 + $0x134] ss:$8 sps:$4 sm:$0xff]  }
 0x274   : > { %v1005_v16 = vadd.f32 %v1004_v11, %v3060_v1  ;;  %v1006_v13 = vpop.f32.mrb[19].mxu1  ;;  %v2124_v14 = vpop.f32.mrb[3].mxu0  ;;  %v1104_v23 = vmax.f32 %v1001_v6, 0.0 }
 0x275   : > { %v1074_v15 = vadd.f32 %v2122_v10, %v3065_v5  ;;  %v1007_v18 = vadd.f32 %v1006_v13, %v3063_v2  ;;  %v2125_v22 = vadd.f32 %v2124_v14, %v2123_v12  ;;  %v1105_v25 = vmax.f32 %v1003_v9, 0.0 }
 0x276   : > { %v1107_v24 = vmax.f32 %v1005_v16, 0.0 }
 0x277   : > { %v1108_v26 = vmax.f32 %v1007_v18, 0.0  ;;  %v1077_v27 = vadd.f32 %v2125_v22, %v3065_v5  ;;  %v1106_v29 = vmax.f32 %v1074_v15, 0.0  ;;  %v2457_v18 = vld [vmem:[#allocation8 + $0x130] ss:$8 sps:$4 sm:$0xff]  }
 0x278   : > { %v1128_v28 = vpack.c.bf16 %v1107_v24, %v1104_v23  ;;  %v2462_v24 = vld [vmem:[#allocation8 + $0x144] ss:$8 sps:$4 sm:$0xff]  }
 0x279   : > { %v1129_v30 = vpack.c.bf16 %v1108_v26, %v1105_v25  ;;  %v1109_v31 = vmax.f32 %v1077_v27, 0.0  ;;  %v1010_v32 = vpop.f32.mrb[20].mxu1  ;;  %v2126_v33 = vpop.f32.mrb[4].mxu0 }
 0x27a   : > { %v1011_v21 = vadd.f32 %v1010_v32, %v3060_v1  ;;  %v1012_v34 = vpop.f32.mrb[21].mxu1  ;;  %v2127_v35 = vpop.f32.mrb[5].mxu0 }
 0x27b   : > { %v3074_v37 = vpack.c.bf16 %v1109_v31, %v1106_v29  ;;  %v1013_v38 = vadd.f32 %v1012_v34, %v3063_v2  ;;  %v2128_v39 = vadd.f32 %v2127_v35, %v2126_v33  ;;  %v1014_v40 = vpop.f32.mrb[22].mxu1  ;;  %v2129_v41 = vpop.f32.mrb[6].mxu0  ;;  %1472 = vmatprep.mubr.bf16.mxu0 %v1129_v30 }
 0x27c   : > { %v1015_v42 = vadd.f32 %v1014_v40, %v3060_v1  ;;  %v1016_v43 = vpop.f32.mrb[23].mxu1  ;;  %v2130_v44 = vpop.f32.mrb[7].mxu0  ;;  %1473 = vmatmul.mubr.bf16.vlgmr.msra.gmra.mrb[16].mxu0 %v1128_v28  ;;  %v1110_v49 = vmax.f32 %v1011_v21, 0.0 }
 0x27d   : > { %v1082_v45 = vadd.f32 %v2128_v39, %v3065_v5  ;;  %v1017_v46 = vadd.f32 %v1016_v43, %v3063_v2  ;;  %v2131_v47 = vadd.f32 %v2130_v44, %v2129_v41  ;;  %1514 = vmatpush1.bf16.msra.mxu0 %v2448_v20  ;;  %v1111_v52 = vmax.f32 %v1013_v38, 0.0  ;;  %v2460_v20 = vld [vmem:[#allocation8 + $0x140] ss:$8 sps:$4 sm:$0xff]  }
 0x27e   : > { %v1113_v50 = vmax.f32 %v1015_v42, 0.0  ;;  %1515 = vmatprep.subr.bf16.mxu0 %v2453_v36  ;;  %v2465_v36 = vld [vmem:[#allocation8 + $0x154] ss:$8 sps:$4 sm:$0xff]  }
 0x27f   : > { %v1114_v53 = vmax.f32 %v1017_v46, 0.0  ;;  %v1085_v54 = vadd.f32 %v2131_v47, %v3065_v5  ;;  %v1112_v56 = vmax.f32 %v1082_v45, 0.0 }
 0x280   : > { %v1131_v55 = vpack.c.bf16 %v1113_v50, %v1110_v49  ;;  %v2463_v49 = vld [vmem:[#allocation8 + $0x150] ss:$8 sps:$4 sm:$0xff]  }
 0x281   : > { %v1132_v57 = vpack.c.bf16 %v1114_v53, %v1111_v52  ;;  %v1115_v58 = vmax.f32 %v1085_v54, 0.0  ;;  %1516 = vmatpush1.bf16.msra.mxu0 %v2451_v48  ;;  %v1020_v59 = vpop.f32.mrb[24].mxu1  ;;  %v2132_v60 = vpop.f32.mrb[8].mxu0  ;;  %v2468_v52 = vld [vmem:[#allocation8 + $0x164] ss:$8 sps:$4 sm:$0xff]  }
 0x282   : > { %v1021_v62 = vadd.f32 %v1020_v59, %v3060_v1  ;;  %v1022_v63 = vpop.f32.mrb[25].mxu1  ;;  %v2133_v3 = vpop.f32.mrb[9].mxu0  ;;  %1517 = vmatprep.subr.bf16.mxu0 %v2456_v51  ;;  %v2466_v59 = vld [vmem:[#allocation8 + $0x160] ss:$8 sps:$4 sm:$0xff]  }
 0x283   : > { %v1023_v6 = vadd.f32 %v1022_v63, %v3063_v2  ;;  %v2134_v7 = vadd.f32 %v2133_v3, %v2132_v60  ;;  %v1024_v8 = vpop.f32.mrb[26].mxu1  ;;  %v2135_v9 = vpop.f32.mrb[10].mxu0  ;;  %1482 = vmatprep.mubr.bf16.mxu0 %v1132_v57  ;;  %v3083_v10 = vpack.c.bf16 %v1115_v58, %v1112_v56  ;;  %v2471_v60 = vld [vmem:[#allocation8 + $0x174] ss:$8 sps:$4 sm:$0xff]  }
 0x284   : > { %v1025_v11 = vadd.f32 %v1024_v8, %v3060_v1  ;;  %v1026_v12 = vpop.f32.mrb[27].mxu1  ;;  %v2136_v16 = vpop.f32.mrb[11].mxu0  ;;  %1483 = vmatmul.mubr.bf16.gmra.mrb[20].mxu0 %v1131_v55  ;;  %v1116_v22 = vmax.f32 %v1021_v62, 0.0  ;;  %v2485_v62 = vld [vmem:[#allocation10 + $0x30] sm:$0xff]   ;;  %v2486_v63 = vld [vmem:[#allocation10 + $0x78] sm:$0xff]  }
 0x285   : > { %v1090_v13 = vadd.f32 %v2134_v7, %v3065_v5  ;;  %v1027_v14 = vadd.f32 %v1026_v12, %v3063_v2  ;;  %v2137_v15 = vadd.f32 %v2136_v16, %v2135_v9  ;;  %1518 = vmatpush1.bf16.msra.mxu0 %v2454_v61  ;;  %v1117_v25 = vmax.f32 %v1023_v6, 0.0  ;;  %v2469_v61 = vld [vmem:[#allocation8 + $0x170] ss:$8 sps:$4 sm:$0xff]  }
 0x286   : > { %v1119_v23 = vmax.f32 %v1025_v11, 0.0  ;;  %1519 = vmatprep.subr.bf16.mxu0 %v2459_v4  ;;  %v2487_v3 = vld [vmem:[#allocation10 + $0x38] sm:$0xff]  }
 0x287   : > { %v1120_v26 = vmax.f32 %v1027_v14, 0.0  ;;  %v1093_v27 = vadd.f32 %v2137_v15, %v3065_v5  ;;  %v1118_v29 = vmax.f32 %v1090_v13, 0.0 }
 0x288   : > { %v1134_v28 = vpack.c.bf16 %v1119_v23, %v1116_v22 }
 0x289   : > { %v1135_v30 = vpack.c.bf16 %v1120_v26, %v1117_v25  ;;  %v1121_v31 = vmax.f32 %v1093_v27, 0.0  ;;  %1520 = vmatpush1.bf16.msra.mxu0 %v2457_v18  ;;  %v1030_v32 = vpop.f32.mrb[28].mxu1  ;;  %v2138_v33 = vpop.f32.mrb[12].mxu0 }
 0x28a   : > { %v1031_v21 = vadd.f32 %v1030_v32, %v3060_v1  ;;  %v1032_v34 = vpop.f32.mrb[29].mxu1  ;;  %v2139_v35 = vpop.f32.mrb[13].mxu0  ;;  %1521 = vmatprep.subr.bf16.mxu0 %v2462_v24 }
 0x28b   : > { %v1033_v38 = vadd.f32 %v1032_v34, %v3063_v2  ;;  %v2140_v39 = vadd.f32 %v2139_v35, %v2138_v33  ;;  %v1034_v40 = vpop.f32.mrb[30].mxu1  ;;  %v2141_v41 = vpop.f32.mrb[14].mxu0  ;;  %1492 = vmatprep.mubr.bf16.mxu0 %v1135_v30  ;;  %v1136_v42 = vpack.c.bf16 %v1121_v31, %v1118_v29 }
 0x28c   : > { %v1035_v43 = vadd.f32 %v1034_v40, %v3060_v1  ;;  %v1036_v44 = vpop.f32.mrb[31].mxu1  ;;  %v2142_v45 = vpop.f32.mrb[15].mxu0  ;;  %1493 = vmatmul.mubr.bf16.gmra.mrb[24].mxu0 %v1134_v28  ;;  %v1122_v50 = vmax.f32 %v1031_v21, 0.0 }
 0x28d   : > { %v1098_v46 = vadd.f32 %v2140_v39, %v3065_v5  ;;  %v1037_v47 = vadd.f32 %v1036_v44, %v3063_v2  ;;  %v2143_v48 = vadd.f32 %v2142_v45, %v2141_v41  ;;  %1522 = vmatpush1.bf16.msra.mxu0 %v2460_v20  ;;  %v1123_v53 = vmax.f32 %v1033_v38, 0.0 }
 0x28e   : > { %v1125_v51 = vmax.f32 %v1035_v43, 0.0  ;;  %1523 = vmatprep.subr.bf16.mxu0 %v2465_v36 }
 0x28f   : > { %v1126_v54 = vmax.f32 %v1037_v47, 0.0  ;;  %v1101_v55 = vadd.f32 %v2143_v48, %v3065_v5  ;;  %v1124_v1 = vmax.f32 %v1098_v46, 0.0  ;;  %v2484_v5 = vld [vmem:[#allocation10 + $0x70] sm:$0xff]  }
 0x290   : > { %v1137_v56 = vpack.c.bf16 %v1125_v51, %v1122_v50  ;;  %2156 = vmatprep.subr.bf16.mxu1 %v2484_v5  ;;  %v2080_v5 = vld [vmem:[%s3179_s8] ss:$0 sm:$0xff] }
 0x291   : > { %v1138_v57 = vpack.c.bf16 %v1126_v54, %v1123_v53  ;;  %v1127_v58 = vmax.f32 %v1101_v55, 0.0  ;;  %1524 = vmatpush1.bf16.msra.mxu0 %v2463_v49  ;;  %2157 = vmatpush3.bf16.msra.mxu1 %v2485_v62 }
 0x292   : > { %1525 = vmatprep.subr.bf16.mxu0 %v2468_v52  ;;  %2158 = vmatprep.subr.bf16.mxu1 %v2486_v63 }
 0x293   : > { %1502 = vmatprep.mubr.bf16.mxu0 %v1138_v57  ;;  %v1139_v2 = vpack.c.bf16 %v1127_v58, %v1124_v1 }
 0x294   : > { %1503 = vmatmul.mubr.bf16.gmra.mrb[28].mxu0 %v1137_v56 }
 0x295   : > { %1526 = vmatpush1.bf16.msra.mxu0 %v2466_v59  ;;  %1545 = vmatprep.mubr.bf16.mxu0 %v2717_v0 }
 0x296   : > { %1527 = vmatprep.subr.bf16.mxu0 %v2471_v60  ;;  %2159 = vmatpush3.bf16.msra.mxu1 %v2487_v3 }
 0x299   : > { %1528 = vmatpush1.bf16.msra.mxu0 %v2469_v61 }
 0x29c   : > { %1546 = vmatmul.mubr.bf16.vlgmr.msra.gmra.mrb[16].mxu0 %v3074_v37  ;;  %v1188_v37 = vld [vmem:[%s3177_s6] sm:$0x3] }
 0x29d   : > { %1555 = vmatprep.mubr.bf16.mxu0 %v2717_v0  ;;  %v1193_v4 = vrot.slane %v1188_v37, %v3025_v17  ;;  %v1197_v6 = vrot.slane %v1188_v37, %v3031_v19 }
 0x2a4   : > { %1556 = vmatmul.mubr.bf16.gmra.mrb[20].mxu0 %v3083_v10 }
 0x2a5   : > { %1565 = vmatprep.mubr.bf16.mxu0 %v2717_v0 }
 0x2ac   : > { %1566 = vmatmul.mubr.bf16.gmra.mrb[24].mxu0 %v1136_v42 }
 0x2ad   : > { %1575 = vmatprep.mubr.bf16.mxu0 %v2717_v0 }
 0x2b4   : > { %1576 = vmatmul.mubr.bf16.gmra.mrb[28].mxu0 %v1139_v2 }
 0x36f   : > { %v1547_v7 = vpop.f32.mrb[16].mxu0 }
 0x370   : > { %v2184_v8 = vadd.f32 %v1547_v7, %v1193_v4  ;;  %v1549_v0 = vpop.f32.mrb[17].mxu0 }
 0x371   : > { %v2185_v9 = vadd.f32 %v1549_v0, %v1197_v6  ;;  %v1551_v10 = vpop.f32.mrb[18].mxu0 }
 0x372   : > { %v2186_v11 = vadd.f32 %v1551_v10, %v1193_v4  ;;  %v1553_v12 = vpop.f32.mrb[19].mxu0  ;;  %v1586_v13 = vmax.f32 %v2184_v8, 0.0 }
 0x373   : > { %v2187_v16 = vadd.f32 %v1553_v12, %v1197_v6  ;;  %v1587_v15 = vmax.f32 %v2185_v9, 0.0 }
 0x374   : > { %v1588_v14 = vmax.f32 %v2186_v11, 0.0 }
 0x375   : > { %v1589_v18 = vmax.f32 %v2187_v16, 0.0 }
 0x376   : > { %v1602_v22 = vpack.c.bf16 %v1588_v14, %v1586_v13 }
 0x377   : > { %v1603_v23 = vpack.c.bf16 %v1589_v18, %v1587_v15  ;;  %v1557_v24 = vpop.f32.mrb[20].mxu0 }
 0x378   : > { %v2188_v25 = vadd.f32 %v1557_v24, %v1193_v4  ;;  %v1559_v26 = vpop.f32.mrb[21].mxu0 }
 0x379   : > { %v2189_v17 = vadd.f32 %v1559_v26, %v1197_v6  ;;  %v1561_v27 = vpop.f32.mrb[22].mxu0  ;;  %1777 = vmatprep.mubr.bf16.mxu1 %v1603_v23 }
 0x37a   : > { %v2190_v19 = vadd.f32 %v1561_v27, %v1193_v4  ;;  %v1563_v28 = vpop.f32.mrb[23].mxu0  ;;  %1778 = vmatmul.mubr.bf16.vlgmr.msra.gmra.mrb[32].mxu1 %v1602_v22  ;;  %v1590_v30 = vmax.f32 %v2188_v25, 0.0 }
 0x37b   : > { %v2191_v29 = vadd.f32 %v1563_v28, %v1197_v6  ;;  %v1591_v32 = vmax.f32 %v2189_v17, 0.0 }
 0x37c   : > { %v1592_v31 = vmax.f32 %v2190_v19, 0.0 }
 0x37d   : > { %v1593_v33 = vmax.f32 %v2191_v29, 0.0 }
 0x37e   : > { %v1604_v20 = vpack.c.bf16 %v1592_v31, %v1590_v30 }
 0x37f   : > { %v1605_v21 = vpack.c.bf16 %v1593_v33, %v1591_v32  ;;  %v1567_v34 = vpop.f32.mrb[24].mxu0 }
 0x380   : > { %v2192_v35 = vadd.f32 %v1567_v34, %v1193_v4  ;;  %v1569_v36 = vpop.f32.mrb[25].mxu0 }
 0x381   : > { %v2193_v38 = vadd.f32 %v1569_v36, %v1197_v6  ;;  %v1571_v39 = vpop.f32.mrb[26].mxu0  ;;  %1785 = vmatprep.mubr.bf16.mxu1 %v1605_v21 }
 0x382   : > { %v2194_v40 = vadd.f32 %v1571_v39, %v1193_v4  ;;  %v1573_v41 = vpop.f32.mrb[27].mxu0  ;;  %1786 = vmatmul.mubr.bf16.gmra.mrb[36].mxu1 %v1604_v20  ;;  %v1594_v43 = vmax.f32 %v2192_v35, 0.0 }
 0x383   : > { %v2195_v42 = vadd.f32 %v1573_v41, %v1197_v6  ;;  %v1595_v45 = vmax.f32 %v2193_v38, 0.0 }
 0x384   : > { %v1596_v44 = vmax.f32 %v2194_v40, 0.0 }
 0x385   : > { %v1597_v46 = vmax.f32 %v2195_v42, 0.0 }
 0x386   : > { %v1606_v47 = vpack.c.bf16 %v1596_v44, %v1594_v43 }
 0x387   : > { %v1607_v48 = vpack.c.bf16 %v1597_v46, %v1595_v45  ;;  %v1577_v49 = vpop.f32.mrb[28].mxu0 }
 0x388   : > { %v2196_v50 = vadd.f32 %v1577_v49, %v1193_v4  ;;  %v1579_v51 = vpop.f32.mrb[29].mxu0 }
 0x389   : > { %v2197_v52 = vadd.f32 %v1579_v51, %v1197_v6  ;;  %v1581_v53 = vpop.f32.mrb[30].mxu0  ;;  %1793 = vmatprep.mubr.bf16.mxu1 %v1607_v48 }
 0x38a   : > { %v2198_v54 = vadd.f32 %v1581_v53, %v1193_v4  ;;  %v1583_v55 = vpop.f32.mrb[31].mxu0  ;;  %1794 = vmatmul.mubr.bf16.gmra.mrb[40].mxu1 %v1606_v47  ;;  %v1598_v1 = vmax.f32 %v2196_v50, 0.0 }
 0x38b   : > { %v2199_v56 = vadd.f32 %v1583_v55, %v1197_v6  ;;  %v1599_v58 = vmax.f32 %v2197_v52, 0.0 }
 0x38c   : > { %v1600_v57 = vmax.f32 %v2198_v54, 0.0 }
 0x38d   : > { %v1601_v59 = vmax.f32 %v2199_v56, 0.0 }
 0x38e   : > { %v1608_v60 = vpack.c.bf16 %v1600_v57, %v1598_v1 }
 0x38f   : > { %v1609_v2 = vpack.c.bf16 %v1601_v59, %v1599_v58 }
 0x391   : > { %1801 = vmatprep.mubr.bf16.mxu1 %v1609_v2 }
 0x392   : > { %1802 = vmatmul.mubr.bf16.gmra.mrb[44].mxu1 %v1608_v60 }
 0x44d   : > { %v2160_v61 = vpop.f32.mrb[32].mxu1 }
 0x44e   : > { %v2161_v62 = vpop.f32.mrb[33].mxu1 }
 0x44f   : > { %v2162_v63 = vadd.f32 %v2161_v62, %v2160_v61  ;;  %v2163_v3 = vpop.f32.mrb[34].mxu1 }
 0x450   : > { %v2164_v37 = vpop.f32.mrb[35].mxu1 }
 0x451   : > { %v1780_v4 = vadd.f32 %v2162_v63, %v2080_v5  ;;  %v2165_v6 = vadd.f32 %v2164_v37, %v2163_v3 }
 0x453   : > { %v1810_v7 = vmax.f32 %v1780_v4, 0.0  ;;  %v1783_v8 = vadd.f32 %v2165_v6, %v2080_v5 }
 0x455   : > { %1818 = vst [vmem:[%s3111_s30] sm:$0xff] %v1810_v7  ;;  %v1811_v0 = vmax.f32 %v1783_v8, 0.0  ;;  %v2166_v9 = vpop.f32.mrb[36].mxu1 }
 0x456   : > { %v2167_v10 = vpop.f32.mrb[37].mxu1 }
 0x457   : > { %1819 = vst [vmem:[%s3111_s30 + $0x8] sm:$0xff] %v1811_v0  ;;  %v2168_v11 = vadd.f32 %v2167_v10, %v2166_v9  ;;  %v2169_v12 = vpop.f32.mrb[38].mxu1 }
 0x458   : > { %v2170_v16 = vpop.f32.mrb[39].mxu1 }
 0x459   : > { %v1788_v13 = vadd.f32 %v2168_v11, %v2080_v5  ;;  %v2171_v14 = vadd.f32 %v2170_v16, %v2169_v12 }
 0x45b   : > { %v1812_v15 = vmax.f32 %v1788_v13, 0.0  ;;  %v1791_v18 = vadd.f32 %v2171_v14, %v2080_v5 }
 0x45d   : > { %1820 = vst [vmem:[%s3111_s30 + $0x10] sm:$0xff] %v1812_v15  ;;  %v1813_v22 = vmax.f32 %v1791_v18, 0.0  ;;  %v2172_v23 = vpop.f32.mrb[40].mxu1 }
 0x45e   : > { %v2173_v24 = vpop.f32.mrb[41].mxu1 }
 0x45f   : > { %1821 = vst [vmem:[%s3111_s30 + $0x18] sm:$0xff] %v1813_v22  ;;  %v2174_v25 = vadd.f32 %v2173_v24, %v2172_v23  ;;  %v2175_v26 = vpop.f32.mrb[42].mxu1 }
 0x460   : > { %v2176_v17 = vpop.f32.mrb[43].mxu1 }
 0x461   : > { %v1796_v27 = vadd.f32 %v2174_v25, %v2080_v5  ;;  %v2177_v19 = vadd.f32 %v2176_v17, %v2175_v26 }
 0x463   : > { %v1814_v28 = vmax.f32 %v1796_v27, 0.0  ;;  %v1799_v29 = vadd.f32 %v2177_v19, %v2080_v5 }
 0x465   : > { %1822 = vst [vmem:[%s3111_s30 + $0x20] sm:$0xff] %v1814_v28  ;;  %v1815_v30 = vmax.f32 %v1799_v29, 0.0  ;;  %v2178_v31 = vpop.f32.mrb[44].mxu1 }
 0x466   : > { %v2179_v32 = vpop.f32.mrb[45].mxu1 }
 0x467   : > { %1823 = vst [vmem:[%s3111_s30 + $0x28] sm:$0xff] %v1815_v30  ;;  %v2180_v33 = vadd.f32 %v2179_v32, %v2178_v31  ;;  %v2181_v20 = vpop.f32.mrb[46].mxu1 }
 0x468   : > { %v2182_v21 = vpop.f32.mrb[47].mxu1 }
 0x469   : > { %v1804_v34 = vadd.f32 %v2180_v33, %v2080_v5  ;;  %v2183_v35 = vadd.f32 %v2182_v21, %v2181_v20 }
 0x46b   : > { %v1816_v36 = vmax.f32 %v1804_v34, 0.0  ;;  %v1807_v38 = vadd.f32 %v2183_v35, %v2080_v5 }
 0x46d   : > { %1824 = vst [vmem:[%s3111_s30 + $0x30] sm:$0xff] %v1816_v36  ;;  %v1817_v39 = vmax.f32 %v1807_v38, 0.0 }
 0x46f   : > { %1825 = vst [vmem:[%s3111_s30 + $0x38] sm:$0xff] %v1817_v39 }
 0x470   : > { %2643 = shalt.err (!%p2640_p12)
}
 0x471   : > { %s2644_s20 = scalar_lea.hbm %s3126_s15, 1024  ;;  %s2648_s30 = scalar_lea.hbm %s3208_s14, 4096 }
 0x472   : > { %p2645_p9 = scmp.ne.s32.totalorder %s3126_s15, %s2644_s20  ;;  %p2649_p4 = scmp.lt.u32.totalorder %s3126_s15, %s3208_s14 }
 0x473   : > { %p2650_p8 = scmp.lt.u32.totalorder %s2648_s30, %s2644_s20  ;;  %p2652_p0 = scmp.lt.u32.totalorder %s2644_s20, %s3126_s15 }
 0x474   : > { %p2646_p13 = pnand %p2645_p9, %p2938_p3 }
 0x475   : > { %p2651_p6 = por %p2650_p8, %p2649_p4 }
 0x476   : > { %p2647_p10 = pneg %p2646_p13 }
 0x477   : > { %p2653_p5 = por %p2652_p0, %p2651_p6 }
 0x479   : > { %p2654_p7 = pnand %p2653_p5, %p2647_p10 }
 0x47b   : > { %2657 = shalt.err (!%p2654_p7)
}
 0x47c   : > { %s2719_s21 = smov 128   ;;  %s2720_s19 = smov 8  }
 0x47d   : > { %2234 = dma.vmem_to_hbm [thread:$0]  (%p2938_p3), %s3121_s26, 1024, %s3126_s15, %s1827_s17, %s2719_s21, %s2719_s21, %s2720_s19  }
 0x47e PF: > { %s3209_s13 = sld [smem:[#allocation16_spill]]  ;;  %s3210_s22 = sld [smem:[#allocation17_spill]] }
 0x47f   : > { %p2266_p11 = scmp.ge.s32.totalorder %s2704_s12, 2 }
 0x484   : > { %s1855_s25 = sand.u32 1, %s3209_s13   ;;  %p3211_p1 = scmp.ne.s32.totalorder %s3210_s22, 0 }
 0x485   : > { %s1856_s20 = scalar_lea.sflag [#allocation4], %s1855_s25 }
 0x486   : > { %p2254_p2 = pnand %p2266_p11, %p3211_p1 }
 0x488   : > { %2687 = dma.done.wait (!%p2254_p2), %s1856_s20, 1024  }
 0x489   : > { %2689 = vsyncadd (!%p2254_p2), %s1856_s20, 4294966272  ;;  %p24_p12 = scmp.ge.s32.totalorder %s2925_s9, 6   ;;  %s3212_s30 = smov %s2696_s10 }
 0x48a   : > { %s3213_s10 = smov %s2700_s11  ;;  %s3214_s11 = smov %s2934_s27 }
 0x48b   : > { %s3215_s12 = smov %s2925_s9  ;;  %26 = sbr.rel (!%p24_p12) target bundleno = 9 (0x9), region = 117 }
 0x492   :  { %1861 = vsyncpa [#allocation3], 1 }
 0x493   :  { %1863 = vsyncpa [#allocation3 + $0x1], 1 }
 0x494   :  { %1864 = vsyncpa [#allocation6], 1 }
 0x495   :  { %1865 = vsyncpa [#allocation9], 1 }
 0x496   :  { %1866 = vsyncpa [#allocation4], 1 }
 0x497   :  { %1868 = vsyncpa [#allocation4 + $0x1], 1 }

</bundles_post_ra>
